<compile_context>
chip_gen: v7x
topology: tpu7x:2x2x1
jax: 0.10.0
libtpu: 0.0.40
codegen_flags: <defaults>
</compile_context>

<pallas_src>
import jax
import jax.numpy as jnp
from jax.experimental import pallas as pl
from jax.experimental.pallas import tpu as pltpu


TM_MAX, TN_MAX, TK_MAX = 256, 256, 2048


def _round_up(x: int, m: int) -> int:
    return ((x + m - 1) // m) * m


def _pick_tile(dim: int, max_tile: int, unit: int):
    """Pick a tile size for `dim`.

    Returns (tile, padded_dim).  If the whole dim fits in one block we use a full-extent block
    (always legal under the (8,128) rule, no padding).  Otherwise prefer the largest tile that
    is a multiple of `unit` and divides the dim exactly (no padding); failing that, fall back
    to max_tile and round the dim up (padding required).
    """
    if dim <= max_tile:
        return dim, dim
    for cand in range(max_tile, unit - 1, -unit):
        if dim % cand == 0:
            return cand, dim
    return max_tile, _round_up(dim, max_tile)


# ---------------------------------------------------------------------------
# One-time (parameter-load-time) weight preparation
# ---------------------------------------------------------------------------
def prepare_net_params(w, b, C: int, H: int, W: int):
    """Fold transpose(1,-1)/225 into the weight, pad to the tile grid, cast weight to bf16.

    `w` has shape (W*H*C, N) and expects the flatten of transpose(1,-1)(states), i.e. row
    index (w*H*C + h*C + c).  The returned weight has shape (Kp, Np) with row index
    (c*H*W + h*W + w), pre-scaled by 1/225, so that
        states.reshape(B, C*H*W) @ w_folded == (transpose(states,(0,3,2,1))/225).reshape(B,-1) @ w
    Runs once outside the per-call forward, so it adds zero per-step HBM traffic.
    """
    K, N = w.shape
    assert K == W * H * C, (K, W * H * C)

    w_f = jnp.transpose(w.reshape(W, H, C, N), (2, 1, 0, 3)).reshape(K, N)
    w_f = w_f * (1.0 / 225.0)

    tk, Kp = _pick_tile(K, TK_MAX, 128)
    tn, Np = _pick_tile(N, TN_MAX, 128)

    if (Kp, Np) != (K, N):
        w_f = jnp.pad(w_f, ((0, Kp - K), (0, Np - N)))
    b_f = jnp.asarray(b, jnp.float32).reshape(1, N)
    if Np != N:
        b_f = jnp.pad(b_f, ((0, 0), (0, Np - N)))

    w_prep = w_f.astype(jnp.bfloat16)
    meta = {"K": K, "N": N, "Kp": Kp, "Np": Np, "tk": tk, "tn": tn}
    return w_prep, b_f, meta


# ---------------------------------------------------------------------------
# Fused tiled matmul + bias + ReLU kernel:  out = relu(x @ w + b)
# ---------------------------------------------------------------------------
def _linear_relu_kernel(x_ref, w_ref, b_ref, o_ref):
    k = pl.program_id(2)

    @pl.when(k == 0)
    def _():
        o_ref[...] = jnp.zeros_like(o_ref)

    # Output block is resident across the K axis (index_map ignores k) -> accumulate in place.
    o_ref[...] += jnp.dot(x_ref[...], w_ref[...], preferred_element_type=jnp.float32)

    @pl.when(k == pl.num_programs(2) - 1)
    def _():
        o_ref[...] = jnp.maximum(o_ref[...] + b_ref[...], 0.0)


def _linear_relu(x, w_prep, b_prep, meta):
    M, K = x.shape
    assert K == meta["K"], (K, meta["K"])
    Kp, Np, tk, tn = meta["Kp"], meta["Np"], meta["tk"], meta["tn"]
    N = meta["N"]

    tm, Mp = _pick_tile(M, TM_MAX, 8)

    if (Mp, Kp) != (M, K):
        # Only taken for large, misaligned shapes; the demo path does not pad at runtime.
        x = jnp.pad(x, ((0, Mp - M), (0, Kp - K)))

    grid = (Mp // tm, Np // tn, Kp // tk)
    gm, gn, _ = grid

    out = pl.pallas_call(
        _linear_relu_kernel,
        out_shape=jax.ShapeDtypeStruct((Mp, Np), jnp.float32),
        grid_spec=pltpu.PrefetchScalarGridSpec(
            num_scalar_prefetch=0,
            grid=grid,
            in_specs=[
                pl.BlockSpec((tm, tk), lambda i, j, k: (i, k)),
                pl.BlockSpec((tk, tn), lambda i, j, k: (k, j)),
                pl.BlockSpec((1, tn), lambda i, j, k: (0, j)),
            ],
            out_specs=pl.BlockSpec((tm, tn), lambda i, j, k: (i, j)),
        ),
        compiler_params=pltpu.CompilerParams(
            # M/N axes parallel (megacore / v7x 2-TC sharding); K is the reduction -> arbitrary.
            dimension_semantics=("parallel", "parallel", "arbitrary"),
        ),
        cost_estimate=pl.CostEstimate(
            flops=2 * Mp * Kp * Np,
            transcendentals=0,
            bytes_accessed=(
                Mp * Kp * 2 * gn      # bf16 activations, re-streamed once per N tile
                + Kp * Np * 2 * gm    # bf16 weights, re-streamed once per M tile
                + Np * 4 * gm         # f32 bias
                + Mp * Np * 4         # f32 output
            ),
        ),
    )(x, w_prep, b_prep)

    if (Mp, Np) != (M, N):
        out = out[:M, :N]
    return out


# ---------------------------------------------------------------------------
# Full PreprocessNet forward (transpose(1,-1)/225 folded into the prepared weights)
# ---------------------------------------------------------------------------
def preprocess_net_forward(states, w_prep, b_prep, meta):
    B = states.shape[0]
    # Pixel values 0..255 are exact in bf16 (the 1/225 scale lives in the folded weight).
    x = states.reshape(B, -1).astype(jnp.bfloat16)
    return _linear_relu(x, w_prep, b_prep, meta)


if __name__ == "__main__":
    B, C, H, W = 2, 4, 16, 16                      # small Atari-like stacked-frame input
    HIDDEN = 32

    key = jax.random.PRNGKey(0)
    k_x, k_w, k_b = jax.random.split(key, 3)

    # Integer pixel-valued states in [0, 255] (exact in bf16, same numerics as torch uint8).
    states = jnp.round(
        jax.random.uniform(k_x, (B, C, H, W), jnp.float32, 0.0, 255.0)
    )

    K = W * H * C
    w = jax.random.normal(k_w, (K, HIDDEN), jnp.float32) * 0.01
    b = jax.random.normal(k_b, (HIDDEN,), jnp.float32) * 0.01

    # One-time parameter prep (fold + pad + bf16 cast) OUTSIDE the per-call forward.
    w_prep, b_prep, meta = prepare_net_params(w, b, C, H, W)

    fwd = jax.jit(lambda s, wp, bp: preprocess_net_forward(s, wp, bp, meta))
    out = jax.block_until_ready(fwd(states, w_prep, b_prep))

    # Pure-JAX reference for the original semantics: transpose(1,-1)/225 -> flatten -> linear -> relu.
    ref_pre = jnp.transpose(states, (0, 3, 2, 1)) / 225.0
    ref_out = jnp.maximum(ref_pre.reshape(B, -1) @ w + b, 0.0)

    assert out.shape == (B, HIDDEN), out.shape
    assert jnp.allclose(out, ref_out, rtol=1e-2, atol=1e-2), float(
        jnp.max(jnp.abs(out - ref_out))
    )

    print("KERNEL_OK")
</pallas_src>

<mosaic_0001>
module attributes {stable_mosaic.version = 11 : i64} {
  func.func @_linear_relu_kernel(%arg0: i32, %arg1: i32, %arg2: i32, %arg3: memref<2x1024xbf16, #tpu.memory_space<vmem>>, %arg4: memref<1024x32xbf16, #tpu.memory_space<vmem>>, %arg5: memref<1x32xf32, #tpu.memory_space<vmem>>, %arg6: memref<2x32xf32, #tpu.memory_space<vmem>>) attributes {dimension_semantics = [#tpu.dimension_semantics<parallel>, #tpu.dimension_semantics<parallel>, #tpu.dimension_semantics<arbitrary>], iteration_bounds = array<i64: 1, 1, 1>, scalar_prefetch = 0 : i64, scratch_operands = 0 : i64, tpu.core_type = #tpu.core_type<tc>, window_params = [{transform_indices = @transform_0, window_bounds = array<i64: 2, 1024>}, {transform_indices = @transform_1, window_bounds = array<i64: 1024, 32>}, {transform_indices = @transform_2, window_bounds = array<i64: 1, 32>}, {transform_indices = @transform_3, window_bounds = array<i64: 2, 32>}]} {
    %c0_i32 = arith.constant 0 : i32
    %0 = arith.cmpi eq, %arg2, %c0_i32 : i32
    %1 = arith.extui %0 : i1 to i32
    %c0_i32_0 = arith.constant 0 : i32
    %2 = arith.cmpi ne, %1, %c0_i32_0 : i32
    scf.if %2 {
      %cst_10 = arith.constant 0.000000e+00 : f32
      %12 = vector.broadcast %cst_10 : f32 to vector<2x32xf32>
      %c0_11 = arith.constant 0 : index
      %c0_12 = arith.constant 0 : index
      %13 = vector.load %arg6[%c0_11, %c0_12] : memref<2x32xf32, #tpu.memory_space<vmem>>, vector<2x32xf32>
      tpu.vector_store %arg6[%c0_11, %c0_12], %12 {strides = array<i32>} : memref<2x32xf32, #tpu.memory_space<vmem>>, vector<2x32xf32>,
    } else {
    }
    %c0 = arith.constant 0 : index
    %c0_1 = arith.constant 0 : index
    %3 = vector.load %arg6[%c0, %c0_1] : memref<2x32xf32, #tpu.memory_space<vmem>>, vector<2x32xf32>
    %c0_2 = arith.constant 0 : index
    %c0_3 = arith.constant 0 : index
    %4 = vector.load %arg3[%c0_2, %c0_3] : memref<2x1024xbf16, #tpu.memory_space<vmem>>, vector<2x1024xbf16>
    %c0_4 = arith.constant 0 : index
    %c0_5 = arith.constant 0 : index
    %5 = vector.load %arg4[%c0_4, %c0_5] : memref<1024x32xbf16, #tpu.memory_space<vmem>>, vector<1024x32xbf16>
    %cst = arith.constant dense<0.000000e+00> : vector<2x32xf32>
    %6 = tpu.matmul %4, %5, %cst {dimension_numbers = #tpu.dot_dimension_numbers<[1], [0], [0], [1], [0, 0, 1, 1], [], []>} : vector<2x1024xbf16>, vector<1024x32xbf16>, vector<2x32xf32> -> vector<2x32xf32>
    %7 = arith.addf %3, %6 : vector<2x32xf32>
    %c0_6 = arith.constant 0 : index
    %c0_7 = arith.constant 0 : index
    %8 = vector.load %arg6[%c0_6, %c0_7] : memref<2x32xf32, #tpu.memory_space<vmem>>, vector<2x32xf32>
    tpu.vector_store %arg6[%c0_6, %c0_7], %7 {strides = array<i32>} : memref<2x32xf32, #tpu.memory_space<vmem>>, vector<2x32xf32>,
    %c0_i32_8 = arith.constant 0 : i32
    %9 = arith.cmpi eq, %arg2, %c0_i32_8 : i32
    %10 = arith.extui %9 : i1 to i32
    %c0_i32_9 = arith.constant 0 : i32
    %11 = arith.cmpi ne, %10, %c0_i32_9 : i32
    scf.if %11 {
      %c0_10 = arith.constant 0 : index
      %c0_11 = arith.constant 0 : index
      %12 = vector.load %arg6[%c0_10, %c0_11] : memref<2x32xf32, #tpu.memory_space<vmem>>, vector<2x32xf32>
      %c0_12 = arith.constant 0 : index
      %c0_13 = arith.constant 0 : index
      %13 = vector.load %arg5[%c0_12, %c0_13] : memref<1x32xf32, #tpu.memory_space<vmem>>, vector<1x32xf32>
      %14 = vector.broadcast %13 : vector<1x32xf32> to vector<2x32xf32>
      %15 = arith.addf %12, %14 : vector<2x32xf32>
      %cst_14 = arith.constant 0.000000e+00 : f32
      %16 = vector.broadcast %cst_14 : f32 to vector<2x32xf32>
      %17 = arith.maximumf %15, %16 : vector<2x32xf32>
      %c0_15 = arith.constant 0 : index
      %c0_16 = arith.constant 0 : index
      %18 = vector.load %arg6[%c0_15, %c0_16] : memref<2x32xf32, #tpu.memory_space<vmem>>, vector<2x32xf32>
      tpu.vector_store %arg6[%c0_15, %c0_16], %17 {strides = array<i32>} : memref<2x32xf32, #tpu.memory_space<vmem>>, vector<2x32xf32>,
    } else {
    }
    return
  }
  func.func @transform_0(%arg0: i32, %arg1: i32, %arg2: i32) -> (i32, i32) {
    %c0_i32 = arith.constant 0 : i32
    return %arg0, %arg2 : i32, i32
  }
  func.func @transform_1(%arg0: i32, %arg1: i32, %arg2: i32) -> (i32, i32) {
    %c0_i32 = arith.constant 0 : i32
    return %arg2, %arg1 : i32, i32
  }
  func.func @transform_2(%arg0: i32, %arg1: i32, %arg2: i32) -> (i32, i32) {
    %c0_i32 = arith.constant 0 : i32
    %c0_i32_0 = arith.constant 0 : i32
    return %c0_i32, %arg1 : i32, i32
  }
  func.func @transform_3(%arg0: i32, %arg1: i32, %arg2: i32) -> (i32, i32) {
    %c0_i32 = arith.constant 0 : i32
    return %arg0, %arg1 : i32, i32
  }
}

</mosaic_0001>

<bundles_post_ra>
// kernel: _lambda_.1
= control target key start
LH: loop header
LB: loop body
LE: loop exit
PB: predicated region body
PF: predicated region fallthrough
CT: control target
= control target key end

     0   :  { %v157_v28 = vlaneseq  ;;  %v1030_v36 = vmov 1966171168   ;;  %s1279_s0 = inlined_call_operand.vmem [shape: bf16[2,1024], index: 0, kind: input, shape index: {}]   ;;  %s1280_s1 = inlined_call_operand.vmem [shape: bf16[1024,32], index: 1, kind: input, shape index: {}]   ;;  %s1281_s2 = inlined_call_operand.vmem [shape: f32[1,32], index: 2, kind: input, shape index: {}]   ;;  %s1282_s3 = inlined_call_operand.hbm [shape: f32[2,32], index: 3, kind: output, shape index: {}]  }
   0x1   :  { %v941_v0 = vld [vmem:[%s1280_s1 + $0x40] sm:$0xff]   ;;  %v945_v4 = vld [vmem:[%s1280_s1 + $0x48] sm:$0xff]   ;;  %v949_v8 = vld [vmem:[%s1280_s1 + $0x50] sm:$0xff]   ;;  %v155_v37 = vunpack.c.l.s4 %v1030_v36 }
   0x2   :  { %v942_v1 = vld [vmem:[%s1280_s1 + $0xc0] sm:$0xff]   ;;  %850 = vmatprep.subr.bf16.mxu0 %v941_v0  ;;  %v946_v5 = vld [vmem:[%s1280_s1 + $0xc8] sm:$0xff]   ;;  %v950_v9 = vld [vmem:[%s1280_s1 + $0xd0] sm:$0xff]   ;;  %v158_v33 = vshrl.u32 %v157_v28, 7 }
   0x3   :  { %v943_v2 = vld [vmem:[%s1280_s1] sm:$0xff]   ;;  %872 = vmatprep.subr.bf16.mxu1 %v942_v1  ;;  %v947_v6 = vld [vmem:[%s1280_s1 + $0x8] sm:$0xff]   ;;  %v951_v10 = vld [vmem:[%s1280_s1 + $0x10] sm:$0xff]   ;;  %v156_v40 = vunpack.c.0.s8 %v155_v37 }
   0x4   :  { %v944_v3 = vld [vmem:[%s1280_s1 + $0x80] sm:$0xff]   ;;  %851 = vmatpush3.bf16.msra.mxu0 %v943_v2  ;;  %v948_v7 = vld [vmem:[%s1280_s1 + $0x88] sm:$0xff]   ;;  %v952_v11 = vld [vmem:[%s1280_s1 + $0x90] sm:$0xff]  }
   0x5   :  { %873 = vmatpush3.bf16.msra.mxu1 %v944_v3  ;;  %852 = vmatprep.subr.bf16.mxu0 %v945_v4  ;;  %v953_v12 = vld [vmem:[%s1280_s1 + $0x58] sm:$0xff]   ;;  %v957_v16 = vld [vmem:[%s1280_s1 + $0x60] sm:$0xff]   ;;  %v961_v20 = vld [vmem:[%s1280_s1 + $0x68] sm:$0xff]   ;;  %v1158_v41 = vsub.s32 %v156_v40, %v158_v33 }
   0x6   :  { %874 = vmatprep.subr.bf16.mxu1 %v946_v5  ;;  %v954_v13 = vld [vmem:[%s1280_s1 + $0xd8] sm:$0xff]   ;;  %v958_v17 = vld [vmem:[%s1280_s1 + $0xe0] sm:$0xff]   ;;  %v962_v21 = vld [vmem:[%s1280_s1 + $0xe8] sm:$0xff]  }
   0x7   :  { %v955_v14 = vld [vmem:[%s1280_s1 + $0x18] sm:$0xff]   ;;  %v959_v18 = vld [vmem:[%s1280_s1 + $0x20] sm:$0xff]   ;;  %v963_v22 = vld [vmem:[%s1280_s1 + $0x28] sm:$0xff]  }
   0x8   :  { %853 = vmatpush3.bf16.msra.mxu0 %v947_v6  ;;  %v956_v15 = vld [vmem:[%s1280_s1 + $0x98] sm:$0xff]   ;;  %v960_v19 = vld [vmem:[%s1280_s1 + $0xa0] sm:$0xff]   ;;  %v964_v23 = vld [vmem:[%s1280_s1 + $0xa8] sm:$0xff]  }
   0x9   :  { %875 = vmatpush3.bf16.msra.mxu1 %v948_v7  ;;  %854 = vmatprep.subr.bf16.mxu0 %v949_v8  ;;  %v965_v24 = vld [vmem:[%s1280_s1 + $0x70] sm:$0xff]   ;;  %v969_v29 = vld [vmem:[%s1280_s1 + $0x78] sm:$0xff]   ;;  %v23_v34 = vld [vmem:[%s1279_s0] sm:$0xff] }
   0xa   :  { %876 = vmatprep.subr.bf16.mxu1 %v950_v9  ;;  %v966_v25 = vld [vmem:[%s1280_s1 + $0xf0] sm:$0xff]   ;;  %v970_v30 = vld [vmem:[%s1280_s1 + $0xf8] sm:$0xff]   ;;  %v974_v35 = vld [vmem:[%s1280_s1 + $0x140] sm:$0xff]   ;;  %v153_v39 = vcombine.high %v23_v34, %v23_v34  ;;  %v160_v42 = vrot.slane %v23_v34, %v1158_v41 }
   0xb   :  { %v967_v26 = vld [vmem:[%s1280_s1 + $0x30] sm:$0xff]   ;;  %v971_v31 = vld [vmem:[%s1280_s1 + $0x38] sm:$0xff]   ;;  %v975_v38 = vld [vmem:[%s1280_s1 + $0x1c0] sm:$0xff]  }
   0xc   :  { %855 = vmatpush3.bf16.msra.mxu0 %v951_v10  ;;  %v968_v27 = vld [vmem:[%s1280_s1 + $0xb0] sm:$0xff]   ;;  %v972_v32 = vld [vmem:[%s1280_s1 + $0xb8] sm:$0xff]   ;;  %v1162_v43 = vrot.slane %v153_v39, %v1158_v41  ;;  %v168_v44 = vcombine.high %v160_v42, %v160_v42  ;;  %v176_v45 = vrot.slane %v160_v42, %v1158_v41  ;;  %v976_v48 = vld [vmem:[%s1280_s1 + $0x100] sm:$0xff]  }
   0xd   :  { %877 = vmatpush3.bf16.msra.mxu1 %v952_v11  ;;  %856 = vmatprep.subr.bf16.mxu0 %v953_v12  ;;  %v978_v51 = vld [vmem:[%s1280_s1 + $0x148] sm:$0xff]   ;;  %v977_v53 = vld [vmem:[%s1280_s1 + $0x180] sm:$0xff]   ;;  %v982_v57 = vld [vmem:[%s1280_s1 + $0x150] sm:$0xff]  }
   0xe   :  { %878 = vmatprep.subr.bf16.mxu1 %v954_v13  ;;  %v169_v46 = vcombine.high %v1162_v43, %v1162_v43  ;;  %v190_v47 = vrot.slane %v168_v44, %v1158_v41  ;;  %v198_v50 = vcombine.high %v176_v45, %v176_v45  ;;  %v979_v54 = vld [vmem:[%s1280_s1 + $0x1c8] sm:$0xff]   ;;  %v983_v59 = vld [vmem:[%s1280_s1 + $0x1d0] sm:$0xff]   ;;  %v986_v61 = vld [vmem:[%s1280_s1 + $0x158] sm:$0xff]  }
   0xf   :  { %v980_v56 = vld [vmem:[%s1280_s1 + $0x108] sm:$0xff]   ;;  %v984_v60 = vld [vmem:[%s1280_s1 + $0x110] sm:$0xff]   ;;  %v987_v63 = vld [vmem:[%s1280_s1 + $0x1d8] sm:$0xff]  }
  0x10   :  { %857 = vmatpush3.bf16.msra.mxu0 %v955_v14  ;;  %v197_v49 = vrot.slane %v169_v46, %v1158_v41  ;;  %626 = vmatprep.mubr.bf16.mxu0 %v190_v47  ;;  %v200_v52 = vcombine.high %v190_v47, %v190_v47  ;;  %v981_v58 = vld [vmem:[%s1280_s1 + $0x188] sm:$0xff]   ;;  %v985_v62 = vld [vmem:[%s1280_s1 + $0x190] sm:$0xff]   ;;  %v988_v0 = vld [vmem:[%s1280_s1 + $0x118] sm:$0xff]  }
  0x11   :  { %879 = vmatpush3.bf16.msra.mxu1 %v956_v15  ;;  %858 = vmatprep.subr.bf16.mxu0 %v957_v16  ;;  %v990_v1 = vld [vmem:[%s1280_s1 + $0x160] sm:$0xff]   ;;  %v989_v2 = vld [vmem:[%s1280_s1 + $0x198] sm:$0xff]   ;;  %v994_v5 = vld [vmem:[%s1280_s1 + $0x168] sm:$0xff]  }
  0x12   :  { %880 = vmatprep.subr.bf16.mxu1 %v958_v17  ;;  %v201_v55 = vcombine.high %v197_v49, %v197_v49  ;;  %666 = vmatprep.mubr.bf16.mxu1 %v200_v52  ;;  %v991_v3 = vld [vmem:[%s1280_s1 + $0x1e0] sm:$0xff]   ;;  %v995_v7 = vld [vmem:[%s1280_s1 + $0x1e8] sm:$0xff]   ;;  %v998_v9 = vld [vmem:[%s1280_s1 + $0x170] sm:$0xff]  }
  0x13   :  { %v992_v4 = vld [vmem:[%s1280_s1 + $0x120] sm:$0xff]   ;;  %v996_v8 = vld [vmem:[%s1280_s1 + $0x128] sm:$0xff]  }
  0x14   :  { %859 = vmatpush3.bf16.msra.mxu0 %v959_v18  ;;  %v993_v6 = vld [vmem:[%s1280_s1 + $0x1a0] sm:$0xff]  }
  0x15   :  { %881 = vmatpush3.bf16.msra.mxu1 %v960_v19  ;;  %860 = vmatprep.subr.bf16.mxu0 %v961_v20 }
  0x16   :  { %882 = vmatprep.subr.bf16.mxu1 %v962_v21 }
  0x18   :  { %861 = vmatpush3.bf16.msra.mxu0 %v963_v22 }
  0x19   :  { %883 = vmatpush3.bf16.msra.mxu1 %v964_v23  ;;  %862 = vmatprep.subr.bf16.mxu0 %v965_v24 }
  0x1a   :  { %884 = vmatprep.subr.bf16.mxu1 %v966_v25 }
  0x1c   :  { %863 = vmatpush3.bf16.msra.mxu0 %v967_v26 }
  0x1d   :  { %885 = vmatpush3.bf16.msra.mxu1 %v968_v27  ;;  %864 = vmatprep.subr.bf16.mxu0 %v969_v29 }
  0x1e   :  { %886 = vmatprep.subr.bf16.mxu1 %v970_v30 }
  0x20   :  { %865 = vmatpush3.bf16.msra.mxu0 %v971_v31 }
  0x21   :  { %887 = vmatpush3.bf16.msra.mxu1 %v972_v32  ;;  %894 = vmatprep.subr.bf16.mxu0 %v974_v35 }
  0x22   :  { %916 = vmatprep.subr.bf16.mxu1 %v975_v38 }
  0x23   :  { %627 = vmatmul.mubr.bf16.vlgmr.msra.gmra.mrb[0].mxu0 %v176_v45 }
  0x24   :  { %895 = vmatpush3.bf16.msra.mxu0 %v976_v48  ;;  %667 = vmatmul.mubr.bf16.vlgmr.msra.gmra.mrb[0].mxu1 %v198_v50 }
  0x25   :  { %896 = vmatprep.subr.bf16.mxu0 %v978_v51  ;;  %917 = vmatpush3.bf16.msra.mxu1 %v977_v53 }
  0x26   :  { %706 = vmatprep.mubr.bf16.mxu0 %v197_v49  ;;  %918 = vmatprep.subr.bf16.mxu1 %v979_v54 }
  0x27   :  { %746 = vmatprep.mubr.bf16.mxu1 %v201_v55 }
  0x28   :  { %897 = vmatpush3.bf16.msra.mxu0 %v980_v56 }
  0x29   :  { %898 = vmatprep.subr.bf16.mxu0 %v982_v57  ;;  %919 = vmatpush3.bf16.msra.mxu1 %v981_v58 }
  0x2a   :  { %920 = vmatprep.subr.bf16.mxu1 %v983_v59 }
  0x2c   :  { %899 = vmatpush3.bf16.msra.mxu0 %v984_v60 }
  0x2d   :  { %900 = vmatprep.subr.bf16.mxu0 %v986_v61  ;;  %921 = vmatpush3.bf16.msra.mxu1 %v985_v62 }
  0x2e   :  { %922 = vmatprep.subr.bf16.mxu1 %v987_v63 }
  0x30   :  { %901 = vmatpush3.bf16.msra.mxu0 %v988_v0 }
  0x31   :  { %902 = vmatprep.subr.bf16.mxu0 %v990_v1  ;;  %923 = vmatpush3.bf16.msra.mxu1 %v989_v2 }
  0x32   :  { %924 = vmatprep.subr.bf16.mxu1 %v991_v3 }
  0x34   :  { %903 = vmatpush3.bf16.msra.mxu0 %v992_v4 }
  0x35   :  { %904 = vmatprep.subr.bf16.mxu0 %v994_v5 }
  0x36   :  { %8 = vsyncpa [#allocation3], 0  ;;  %925 = vmatpush3.bf16.msra.mxu1 %v993_v6  ;;  %v997_v10 = vld [vmem:[%s1280_s1 + $0x1a8] sm:$0xff]   ;;  %v999_v11 = vld [vmem:[%s1280_s1 + $0x1f0] sm:$0xff]   ;;  %v183_v17 = vrot.slane %v1162_v43, %v1158_v41  ;;  %vm20_vm0 = vcmask 254976   ;;  %v1031_v20 = vmov 0.0  }
  0x37   :  { %926 = vmatprep.subr.bf16.mxu1 %v995_v7  ;;  %v1000_v12 = vld [vmem:[%s1280_s1 + $0x130] sm:$0xff]   ;;  %v1002_v13 = vld [vmem:[%s1280_s1 + $0x178] sm:$0xff]   ;;  %21 = vst.msk [vmem:[#allocation2] sm:$0x3] %vm20_vm0, %v1031_v20  ;;  %v849_v46 = vld [vmem:[%s1281_s2] ss:$0 sm:$0xff] }
  0x38   :  { %905 = vmatpush3.bf16.msra.mxu0 %v996_v8  ;;  %v1001_v14 = vld [vmem:[%s1280_s1 + $0x1b0] sm:$0xff]   ;;  %v1003_v15 = vld [vmem:[%s1280_s1 + $0x1f8] sm:$0xff]   ;;  %v199_v19 = vcombine.high %v183_v17, %v183_v17  ;;  %s1032_s5 = smov [#allocation2]  }
  0x39   :  { %906 = vmatprep.subr.bf16.mxu0 %v998_v9  ;;  %v1004_v16 = vld [vmem:[%s1280_s1 + $0x138] sm:$0xff]   ;;  %s777_s6 = sshll.u32 %s1032_s5, 4  ;;  %s778_s6 = int_to_ptr.vmem [resolvable:$true] %s777_s6 }
  0x3a   :  { %927 = vmatpush3.bf16.msra.mxu1 %v997_v10  ;;  %v1005_v18 = vld [vmem:[%s1280_s1 + $0x1b8] sm:$0xff]   ;;  %s1006_s7 = scalar_lea.vmem %s778_s6, 32  ;;  %p1011_p1 = scmp.lt.s32.totalorder %s778_s6, %s778_s6 }
  0x3b   :  { %928 = vmatprep.subr.bf16.mxu1 %v999_v11  ;;  %p1007_p0 = scmp.ne.s32.totalorder %s778_s6, %s1006_s7  ;;  %p1012_p2 = scmp.lt.s32.totalorder %s1006_s7, %s1006_s7 }
  0x3c   :  { %907 = vmatpush3.bf16.msra.mxu0 %v1000_v12 }
  0x3d   :  { %908 = vmatprep.subr.bf16.mxu0 %v1002_v13  ;;  %p1013_p3 = por %p1012_p2, %p1011_p1 }
  0x3e   :  { %929 = vmatpush3.bf16.msra.mxu1 %v1001_v14  ;;  %v22_v42 = vld [vmem:[#allocation2] sm:$0x3] }
  0x3f   :  { %930 = vmatprep.subr.bf16.mxu1 %v1003_v15  ;;  %p1014_p4 = pnand %p1013_p3, %p1007_p0 }
  0x40   :  { %909 = vmatpush3.bf16.msra.mxu0 %v1004_v16 }
  0x42   :  { %931 = vmatpush3.bf16.msra.mxu1 %v1005_v18 }
  0x43   :  { %707 = vmatmul.mubr.bf16.vlgmr.msra.gmra.mrb[4].mxu0 %v183_v17 }
  0x45   :  { %747 = vmatmul.mubr.bf16.vlgmr.msra.gmra.mrb[4].mxu1 %v199_v19 }
  0xf6   :  { %v866_v21 = vpop.f32.mrb[0].mxu0 }
  0xf7   :  { %v867_v22 = vpop.f32.mrb[1].mxu0  ;;  %v888_v23 = vpop.f32.mrb[0].mxu1 }
  0xf8   :  { %v868_v24 = vadd.f32 %v867_v22, %v866_v21  ;;  %v869_v25 = vpop.f32.mrb[2].mxu0  ;;  %v889_v26 = vpop.f32.mrb[1].mxu1 }
  0xf9   :  { %v870_v27 = vpop.f32.mrb[3].mxu0  ;;  %v890_v28 = vadd.f32 %v889_v26, %v888_v23  ;;  %v891_v29 = vpop.f32.mrb[2].mxu1 }
  0xfa   :  { %v892_v30 = vpop.f32.mrb[3].mxu1 }
  0xfb   :  { %v669_v31 = vadd.f32 %v890_v28, %v868_v24 }
 0x116   :  { %v910_v32 = vpop.f32.mrb[4].mxu0 }
 0x117   :  { %v911_v33 = vpop.f32.mrb[5].mxu0 }
 0x118   :  { %v932_v34 = vpop.f32.mrb[4].mxu1  ;;  %v912_v35 = vadd.f32 %v911_v33, %v910_v32  ;;  %v913_v36 = vpop.f32.mrb[6].mxu0 }
 0x119   :  { %v933_v37 = vpop.f32.mrb[5].mxu1  ;;  %v914_v38 = vpop.f32.mrb[7].mxu0 }
 0x11a   :  { %v709_v39 = vadd.f32 %v912_v35, %v669_v31  ;;  %v934_v40 = vadd.f32 %v933_v37, %v932_v34  ;;  %v935_v41 = vpop.f32.mrb[6].mxu1 }
 0x11b   :  { %v936_v43 = vpop.f32.mrb[7].mxu1 }
 0x11c   :  { %v749_v44 = vadd.f32 %v934_v40, %v709_v39 }
 0x11e   :  { %v754_v45 = vadd.f32 %v749_v44, %v22_v42 }
 0x120   :  { %756 = vst.msk [vmem:[#allocation2] sm:$0x3] %vm20_vm0, %v754_v45 }
 0x127   :  { %v760_v47 = vld [vmem:[#allocation2] sm:$0x3] }
 0x128   :  { %v768_v48 = vadd.f32 %v849_v46, %v760_v47 }
 0x12a   :  { %v769_v49 = vmax.f32 %v768_v48, 0.0 }
 0x12c   :  { %770 = vst.msk [vmem:[#allocation2] sm:$0x3] %vm20_vm0, %v769_v49 }
 0x12d   :  { %1017 = shalt.err (!%p1014_p4)
}
 0x12e   :  { %s1018_s10 = scalar_lea.hbm %s1282_s3, 32 }
 0x12f   :  { %p1019_p5 = scmp.ne.s32.totalorder %s1282_s3, %s1018_s10  ;;  %p1022_p6 = scmp.lt.u32.totalorder %s1018_s10, %s1282_s3 }
 0x131   :  { %p1024_p7 = pnand %p1022_p6, %p1019_p5 }
 0x133   :  { %1027 = shalt.err (!%p1024_p7)
}
 0x134   :  { %780 = dma.vmem_to_hbm [thread:$0]  %s778_s6, 32, %s1282_s3, [#allocation3]  }
 0x135   :  { %1028 = dma.done.wait [#allocation3], 32  }
 0x136   :  { %1029 = vsyncadd [#allocation3], 4294967264 }
 0x137   :  { %784 = vsyncpa [#allocation3], 1 }

</bundles_post_ra>
